<compile_context>
chip_gen: v5e
topology: v5e:2x2
jax: 0.10.0
libtpu: 0.0.40
codegen_flags: <defaults>
</compile_context>

<pallas_src>
import jax
import jax.numpy as jnp
from jax.experimental import pallas as pl
from jax.experimental.pallas import tpu as pltpu

UNITS = 64
PREDS = 1
PACK = 2                     # original rows packed per 128-lane vreg row
LANES = PACK * UNITS         # 128

# lhs (M, K) contracted with rhs (N, K) along K, i.e. lhs @ rhs.T
# (same dimension numbers the TPU flash-attention kernel uses for q @ k^T).
_TRANS_B_DIMS = (((1,), (1,)), ((), ()))


def _round_up(n, k):
    return ((n + k - 1) // k) * k


def _silu_f32(x):
    # x * sigmoid(x) == 0.5 * x * (1 + tanh(x/2)) -- a single EUP push (tanh);
    # the extra mul/add land on the VPU, which has slack.
    return 0.5 * x * (1.0 + jnp.tanh(0.5 * x))


def _sigmoid_f32(x):
    return 0.5 * (1.0 + jnp.tanh(0.5 * x))


def _tensorcore_count():
    """Best-effort TensorCores-per-chip query (2 on v7x, else 1)."""
    try:
        info = pltpu.get_tpu_info()
    except Exception:
        return 1
    for name in ("num_cores", "core_count", "num_tensorcores",
                 "tensorcores_per_chip"):
        v = getattr(info, name, None)
        if isinstance(v, int) and v > 0:
            return min(2, v)
    return 1


def parnet_kernel(x_ref, w0_ref, b0_ref, w1_ref, b1_ref, w2_ref, b2_ref, o_ref):
    # x tile: (tm_p, 128) -- each packed row holds TWO original 64-wide rows.
    x = x_ref[...].astype(jnp.bfloat16)

    # layer 0: Linear(64 -> 64) applied to both packed halves through the
    # 128x128 block-diagonal weight; f32 accumulate, f32 bias + SiLU.
    h = jnp.dot(x, w0_ref[...], preferred_element_type=jnp.float32) + b0_ref[...]
    h = _silu_f32(h)

    # layer 1: Linear(64 -> 64) + SiLU
    h = jnp.dot(h.astype(jnp.bfloat16), w1_ref[...],
                preferred_element_type=jnp.float32) + b1_ref[...]
    h = _silu_f32(h)

    # head: Linear(64 -> 1) + sigmoid, computed transposed so the per-tile
    # result is lane-dense:  (8, 128) x (tm_p, 128)^T -> (8, tm_p).
    # Row 0 of w2_ref covers the even packed half, row 1 the odd half; rows
    # 2..7 are zero padding for sublane alignment.  Keep the tiny head in f32.
    y8 = jax.lax.dot_general(w2_ref[...], h, _TRANS_B_DIMS,
                             preferred_element_type=jnp.float32)
    y = y8[0:2, :] + b2_ref[0]                        # (2, tm_p) + SMEM scalar
    o_ref[0] = _sigmoid_f32(y).astype(o_ref.dtype)    # block is (1, 2, tm_p)


def parnet_forward(x, params, *, tm=8192):
    """x: (..., UNITS) float32 (or bfloat16).  Returns (...,), like ParNet."""
    w0, b0, w1, b1, w2, b2 = params
    lead_shape = x.shape[:-1]
    m = 1
    for d in lead_shape:
        m *= d
    x2d = x.reshape(m, UNITS)

    # Pack two consecutive rows per 128-lane row.  The row-major reshape is
    # free when m is even; the odd-m fallback appends one zero row (rare, tiny,
    # its output is sliced off below).
    if m % PACK:
        x2d = jnp.concatenate([x2d, jnp.zeros((1, UNITS), x2d.dtype)], axis=0)
    m_pack = x2d.shape[0] // PACK
    xp = x2d.reshape(m_pack, LANES)

    # Packed-row tile size.  Big tiles amortize the ~0.35 us per-grid-step
    # overhead; partial last blocks replace host-side padding.  Only split a
    # single big tile in two when the chip actually has two TensorCores (v7x).
    tm_p_req = max(128, ((tm // PACK) // 128) * 128)
    if m_pack <= 8:
        tm_p = m_pack                                  # tiny full-extent tile
    elif m_pack <= tm_p_req:
        tm_p = (m_pack // 8) * 8                       # 8-aligned tile (+ tail)
        if _tensorcore_count() >= 2 and m_pack >= 1024:
            tm_p = _round_up(pl.cdiv(m_pack, 2), 128)  # balance the 2 TCs
    else:
        tm_p = tm_p_req
    num_tiles = pl.cdiv(m_pack, tm_p)

    # Weight prep (tiny, once per call): 128x128 block-diagonal bf16 hidden
    # weights, 128-wide f32 biases, 8x128 head lhs with two live rows.
    zf = jnp.zeros((UNITS, UNITS), w0.dtype)
    w0p = jnp.concatenate(
        [jnp.concatenate([w0, zf], axis=1),
         jnp.concatenate([zf, w0], axis=1)], axis=0).astype(jnp.bfloat16)
    w1p = jnp.concatenate(
        [jnp.concatenate([w1, zf], axis=1),
         jnp.concatenate([zf, w1], axis=1)], axis=0).astype(jnp.bfloat16)
    b0p = jnp.concatenate([b0, b0], axis=1)            # (1, 128) f32
    b1p = jnp.concatenate([b1, b1], axis=1)            # (1, 128) f32
    w2p = jnp.zeros((8, LANES), jnp.float32)
    w2p = w2p.at[0, :UNITS].set(w2[0]).at[1, UNITS:].set(w2[0])
    b2s = b2.reshape((1,)).astype(jnp.float32)         # scalar, via SMEM

    out = pl.pallas_call(
        parnet_kernel,
        out_shape=jax.ShapeDtypeStruct((num_tiles, PACK, tm_p), jnp.float32),
        grid_spec=pltpu.PrefetchScalarGridSpec(
            num_scalar_prefetch=0,
            grid=(num_tiles,),
            in_specs=[
                pl.BlockSpec((tm_p, LANES), lambda i: (i, 0)),      # x tile
                pl.BlockSpec((LANES, LANES), lambda i: (0, 0)),     # w0 blkdiag
                pl.BlockSpec((1, LANES), lambda i: (0, 0)),         # b0
                pl.BlockSpec((LANES, LANES), lambda i: (0, 0)),     # w1 blkdiag
                pl.BlockSpec((1, LANES), lambda i: (0, 0)),         # b1
                pl.BlockSpec((8, LANES), lambda i: (0, 0)),         # w2 lhs
                pl.BlockSpec(memory_space=pltpu.MemorySpace.SMEM),  # b2 scalar
            ],
            out_specs=pl.BlockSpec((1, PACK, tm_p), lambda i: (i, 0, 0)),
        ),
        compiler_params=pltpu.CompilerParams(
            dimension_semantics=("parallel",),
            vmem_limit_bytes=32 * 1024 * 1024),
    )(xp, w0p, b0p, w1p, b1p, w2p, b2s)

    # (num_tiles, 2, tm_p): sublane 0 holds even original rows, sublane 1 odd
    # rows.  Un-interleave on the host (tiny array, 4 B/row), drop the tile /
    # odd-m padding tail, restore leading dims (== squeeze(-1)).
    out = jnp.swapaxes(out, 1, 2).reshape(num_tiles * tm_p * PACK)[:m]
    return out.reshape(lead_shape)


def init_params(key):
    """Deterministic synthetic params matching nn.Linear shapes.

    w0/w1 are stored transposed as (in, out) so the kernel can use x @ W;
    w2 stays in the PyTorch (out=1, in=64) layout because the head is
    computed as w2 @ h^T inside the kernel."""
    ks = jax.random.split(key, 6)
    scale = 1.0 / jnp.sqrt(UNITS)
    w0 = jax.random.uniform(ks[0], (UNITS, UNITS), jnp.float32, -scale, scale)
    b0 = jax.random.uniform(ks[1], (1, UNITS), jnp.float32, -scale, scale)
    w1 = jax.random.uniform(ks[2], (UNITS, UNITS), jnp.float32, -scale, scale)
    b1 = jax.random.uniform(ks[3], (1, UNITS), jnp.float32, -scale, scale)
    w2 = jax.random.uniform(ks[4], (PREDS, UNITS), jnp.float32, -scale, scale)
    b2 = jax.random.uniform(ks[5], (1, PREDS), jnp.float32, -scale, scale)
    return (w0, b0, w1, b1, w2, b2)


def parnet_reference(x, params):
    """Pure-JAX f32 reference of the PyTorch forward for verification."""
    w0, b0, w1, b1, w2, b2 = params
    h = jax.nn.silu(x @ w0 + b0[0])
    h = jax.nn.silu(h @ w1 + b1[0])
    y = jax.nn.sigmoid(h @ w2.T + b2[0])
    return y.squeeze(-1)


if __name__ == "__main__":
    key = jax.random.PRNGKey(0)
    kx, kx2, kx3, kp = jax.random.split(key, 4)
    params = init_params(kp)

    # small example: batch=2, seq=8, hidden=UNITS=64 -> output (2, 8)
    x = jax.random.normal(kx, (2, 8, UNITS), jnp.float32)
    out = jax.block_until_ready(parnet_forward(x, params))
    ref = parnet_reference(x, params)
    assert out.shape == ref.shape == (2, 8), (out.shape, ref.shape)
    err = float(jnp.max(jnp.abs(out - ref)))
    assert err < 3e-2, err   # bf16 matmul operands

    # larger check: exercises the multi-tile grid and the partial last block
    x2 = jax.random.normal(kx2, (3, 1000, UNITS), jnp.float32)
    out2 = jax.block_until_ready(parnet_forward(x2, params))
    ref2 = parnet_reference(x2, params)
    assert out2.shape == ref2.shape == (3, 1000), (out2.shape, ref2.shape)
    err2 = float(jnp.max(jnp.abs(out2 - ref2)))
    assert err2 < 3e-2, err2

    # odd row count exercises the single-row pad of the 2-row lane packing
    x3 = jax.random.normal(kx3, (3, 3, UNITS), jnp.float32)
    out3 = jax.block_until_ready(parnet_forward(x3, params))
    ref3 = parnet_reference(x3, params)
    assert out3.shape == ref3.shape == (3, 3), (out3.shape, ref3.shape)
    err3 = float(jnp.max(jnp.abs(out3 - ref3)))
    assert err3 < 3e-2, err3

    print("KERNEL_OK")
</pallas_src>

<mosaic_0001>
module attributes {stable_mosaic.version = 11 : i64} {
  func.func @parnet_kernel(%arg0: i32, %arg1: memref<8x128xf32, #tpu.memory_space<vmem>>, %arg2: memref<128x128xbf16, #tpu.memory_space<vmem>>, %arg3: memref<1x128xf32, #tpu.memory_space<vmem>>, %arg4: memref<128x128xbf16, #tpu.memory_space<vmem>>, %arg5: memref<1x128xf32, #tpu.memory_space<vmem>>, %arg6: memref<8x128xf32, #tpu.memory_space<vmem>>, %arg7: memref<1xf32, #tpu.memory_space<smem>>, %arg8: memref<1x2x8xf32, #tpu.memory_space<vmem>>) attributes {dimension_semantics = [#tpu.dimension_semantics<parallel>], iteration_bounds = array<i64: 1>, scalar_prefetch = 0 : i64, scratch_operands = 0 : i64, tpu.core_type = #tpu.core_type<tc>, window_params = [{transform_indices = @transform_0, window_bounds = array<i64: 8, 128>}, {pipeline_mode = #tpu.pipeline_mode<synchronous>, transform_indices = @transform_1, window_bounds = array<i64: 128, 128>}, {pipeline_mode = #tpu.pipeline_mode<synchronous>, transform_indices = @transform_2, window_bounds = array<i64: 1, 128>}, {pipeline_mode = #tpu.pipeline_mode<synchronous>, transform_indices = @transform_3, window_bounds = array<i64: 128, 128>}, {pipeline_mode = #tpu.pipeline_mode<synchronous>, transform_indices = @transform_4, window_bounds = array<i64: 1, 128>}, {pipeline_mode = #tpu.pipeline_mode<synchronous>, transform_indices = @transform_5, window_bounds = array<i64: 8, 128>}, {transform_indices = @transform_6, window_bounds = array<i64: 1>}, {transform_indices = @transform_7, window_bounds = array<i64: 1, 2, 8>}]} {
    %c0 = arith.constant 0 : index
    %c0_0 = arith.constant 0 : index
    %0 = vector.load %arg1[%c0, %c0_0] : memref<8x128xf32, #tpu.memory_space<vmem>>, vector<8x128xf32>
    %1 = arith.truncf %0 : vector<8x128xf32> to vector<8x128xbf16>
    %c0_1 = arith.constant 0 : index
    %c0_2 = arith.constant 0 : index
    %2 = vector.load %arg2[%c0_1, %c0_2] : memref<128x128xbf16, #tpu.memory_space<vmem>>, vector<128x128xbf16>
    %cst = arith.constant dense<0.000000e+00> : vector<8x128xf32>
    %3 = tpu.matmul %1, %2, %cst {dimension_numbers = #tpu.dot_dimension_numbers<[1], [0], [0], [1], [0, 0, 1, 1], [], []>} : vector<8x128xbf16>, vector<128x128xbf16>, vector<8x128xf32> -> vector<8x128xf32>
    %c0_3 = arith.constant 0 : index
    %c0_4 = arith.constant 0 : index
    %4 = vector.load %arg3[%c0_3, %c0_4] : memref<1x128xf32, #tpu.memory_space<vmem>>, vector<1x128xf32>
    %5 = vector.broadcast %4 : vector<1x128xf32> to vector<8x128xf32>
    %6 = arith.addf %3, %5 : vector<8x128xf32>
    %cst_5 = arith.constant 5.000000e-01 : f32
    %7 = vector.broadcast %cst_5 : f32 to vector<8x128xf32>
    %8 = arith.mulf %7, %6 : vector<8x128xf32>
    %cst_6 = arith.constant 5.000000e-01 : f32
    %9 = vector.broadcast %cst_6 : f32 to vector<8x128xf32>
    %10 = arith.mulf %9, %6 : vector<8x128xf32>
    %11 = math.tanh %10 : vector<8x128xf32>
    %cst_7 = arith.constant 1.000000e+00 : f32
    %12 = vector.broadcast %cst_7 : f32 to vector<8x128xf32>
    %13 = arith.addf %12, %11 : vector<8x128xf32>
    %14 = arith.mulf %8, %13 : vector<8x128xf32>
    %15 = arith.truncf %14 : vector<8x128xf32> to vector<8x128xbf16>
    %c0_8 = arith.constant 0 : index
    %c0_9 = arith.constant 0 : index
    %16 = vector.load %arg4[%c0_8, %c0_9] : memref<128x128xbf16, #tpu.memory_space<vmem>>, vector<128x128xbf16>
    %cst_10 = arith.constant dense<0.000000e+00> : vector<8x128xf32>
    %17 = tpu.matmul %15, %16, %cst_10 {dimension_numbers = #tpu.dot_dimension_numbers<[1], [0], [0], [1], [0, 0, 1, 1], [], []>} : vector<8x128xbf16>, vector<128x128xbf16>, vector<8x128xf32> -> vector<8x128xf32>
    %c0_11 = arith.constant 0 : index
    %c0_12 = arith.constant 0 : index
    %18 = vector.load %arg5[%c0_11, %c0_12] : memref<1x128xf32, #tpu.memory_space<vmem>>, vector<1x128xf32>
    %19 = vector.broadcast %18 : vector<1x128xf32> to vector<8x128xf32>
    %20 = arith.addf %17, %19 : vector<8x128xf32>
    %cst_13 = arith.constant 5.000000e-01 : f32
    %21 = vector.broadcast %cst_13 : f32 to vector<8x128xf32>
    %22 = arith.mulf %21, %20 : vector<8x128xf32>
    %cst_14 = arith.constant 5.000000e-01 : f32
    %23 = vector.broadcast %cst_14 : f32 to vector<8x128xf32>
    %24 = arith.mulf %23, %20 : vector<8x128xf32>
    %25 = math.tanh %24 : vector<8x128xf32>
    %cst_15 = arith.constant 1.000000e+00 : f32
    %26 = vector.broadcast %cst_15 : f32 to vector<8x128xf32>
    %27 = arith.addf %26, %25 : vector<8x128xf32>
    %28 = arith.mulf %22, %27 : vector<8x128xf32>
    %c0_16 = arith.constant 0 : index
    %c0_17 = arith.constant 0 : index
    %29 = vector.load %arg6[%c0_16, %c0_17] : memref<8x128xf32, #tpu.memory_space<vmem>>, vector<8x128xf32>
    %cst_18 = arith.constant dense<0.000000e+00> : vector<8x8xf32>
    %30 = tpu.matmul %29, %28, %cst_18 {dimension_numbers = #tpu.dot_dimension_numbers<[1], [1], [0], [0], [0, 0, 1, 0], [], []>} : vector<8x128xf32>, vector<8x128xf32>, vector<8x8xf32> -> vector<8x8xf32>
    %31 = vector.extract_strided_slice %30 {offsets = [0, 0], sizes = [2, 8], strides = [1, 1]} : vector<8x8xf32> to vector<2x8xf32>
    %c0_19 = arith.constant 0 : index
    %32 = memref.load %arg7[%c0_19] : memref<1xf32, #tpu.memory_space<smem>>
    %33 = vector.broadcast %32 : f32 to vector<2x8xf32>
    %34 = arith.addf %31, %33 : vector<2x8xf32>
    %cst_20 = arith.constant 5.000000e-01 : f32
    %35 = vector.broadcast %cst_20 : f32 to vector<2x8xf32>
    %36 = arith.mulf %35, %34 : vector<2x8xf32>
    %37 = math.tanh %36 : vector<2x8xf32>
    %cst_21 = arith.constant 1.000000e+00 : f32
    %38 = vector.broadcast %cst_21 : f32 to vector<2x8xf32>
    %39 = arith.addf %38, %37 : vector<2x8xf32>
    %cst_22 = arith.constant 5.000000e-01 : f32
    %40 = vector.broadcast %cst_22 : f32 to vector<2x8xf32>
    %41 = arith.mulf %40, %39 : vector<2x8xf32>
    %c0_23 = arith.constant 0 : index
    %c0_24 = arith.constant 0 : index
    %c0_25 = arith.constant 0 : index
    %42 = vector.load %arg8[%c0_23, %c0_24, %c0_25] : memref<1x2x8xf32, #tpu.memory_space<vmem>>, vector<1x2x8xf32>
    %43 = vector.shape_cast %42 : vector<1x2x8xf32> to vector<2x8xf32>
    %44 = vector.shape_cast %41 : vector<2x8xf32> to vector<1x2x8xf32>
    tpu.vector_store %arg8[%c0_23, %c0_24, %c0_25], %44 {strides = array<i32>} : memref<1x2x8xf32, #tpu.memory_space<vmem>>, vector<1x2x8xf32>,
    return
  }
  func.func @transform_0(%arg0: i32) -> (i32, i32) {
    %c0_i32 = arith.constant 0 : i32
    %c0_i32_0 = arith.constant 0 : i32
    return %arg0, %c0_i32 : i32, i32
  }
  func.func @transform_1(%arg0: i32) -> (i32, i32) {
    %c0_i32 = arith.constant 0 : i32
    %c0_i32_0 = arith.constant 0 : i32
    %c0_i32_1 = arith.constant 0 : i32
    return %c0_i32, %c0_i32_0 : i32, i32
  }
  func.func @transform_2(%arg0: i32) -> (i32, i32) {
    %c0_i32 = arith.constant 0 : i32
    %c0_i32_0 = arith.constant 0 : i32
    %c0_i32_1 = arith.constant 0 : i32
    return %c0_i32, %c0_i32_0 : i32, i32
  }
  func.func @transform_3(%arg0: i32) -> (i32, i32) {
    %c0_i32 = arith.constant 0 : i32
    %c0_i32_0 = arith.constant 0 : i32
    %c0_i32_1 = arith.constant 0 : i32
    return %c0_i32, %c0_i32_0 : i32, i32
  }
  func.func @transform_4(%arg0: i32) -> (i32, i32) {
    %c0_i32 = arith.constant 0 : i32
    %c0_i32_0 = arith.constant 0 : i32
    %c0_i32_1 = arith.constant 0 : i32
    return %c0_i32, %c0_i32_0 : i32, i32
  }
  func.func @transform_5(%arg0: i32) -> (i32, i32) {
    %c0_i32 = arith.constant 0 : i32
    %c0_i32_0 = arith.constant 0 : i32
    %c0_i32_1 = arith.constant 0 : i32
    return %c0_i32, %c0_i32_0 : i32, i32
  }
  func.func @transform_6(%arg0: i32) -> i32 {
    %c0_i32 = arith.constant 0 : i32
    %c0_i32_0 = arith.constant 0 : i32
    return %c0_i32 : i32
  }
  func.func @transform_7(%arg0: i32) -> (i32, i32, i32) {
    %c0_i32 = arith.constant 0 : i32
    %c0_i32_0 = arith.constant 0 : i32
    %c0_i32_1 = arith.constant 0 : i32
    return %arg0, %c0_i32, %c0_i32_0 : i32, i32, i32
  }
}

</mosaic_0001>

<bundles_post_ra>
// kernel: tpu_custom_call.1
= control target key start
LH: loop header
LB: loop body
LE: loop exit
PB: predicated region body
PF: predicated region fallthrough
CT: control target
= control target key end

     0   :  { %13 = vsyncpa [#allocation4], 0  ;;  %s603_s0 = inlined_call_operand.hbm [shape: f32[8,128], index: 0, kind: input, shape index: {}]   ;;  %s604_s1 = inlined_call_operand.hbm [shape: bf16[128,128], index: 1, kind: input, shape index: {}]   ;;  %s605_s2 = inlined_call_operand.vmem [shape: f32[1,128], index: 2, kind: input, shape index: {}]   ;;  %s606_s3 = inlined_call_operand.hbm [shape: bf16[128,128], index: 3, kind: input, shape index: {}]   ;;  %s607_s4 = inlined_call_operand.vmem [shape: f32[1,128], index: 4, kind: input, shape index: {}]   ;;  %s608_s5 = inlined_call_operand.hbm [shape: f32[8,128], index: 5, kind: input, shape index: {}]   ;;  %s609_s6 = inlined_call_operand.<no memory space> [shape: f32[1], index: 6, kind: input, shape index: {}]   ;;  %s610_s7 = inlined_call_operand.hbm [shape: f32[1,2,8], index: 7, kind: output, shape index: {}]  }
   0x1   :  { %14 = vsyncpa [#allocation7], 0 }
   0x2   :  { %15 = vsyncpa [#allocation10], 0  ;;  %s32_s26 = sshll.u32 %s604_s1, 4  ;;  %s33_s26 = int_to_ptr.hbm [resolvable:$true] %s32_s26 }
   0x3   :  { %16 = vsyncpa [#allocation5], 0  ;;  %s532_s27 = smov [#allocation6]   ;;  %s22_s8 = sshll.u32 %s603_s0, 4  ;;  %s23_s8 = int_to_ptr.hbm [resolvable:$true] %s22_s8 }
   0x4   :  { %s34_s28 = sshll.u32 %s532_s27, 4  ;;  %s533_s9 = smov 64   ;;  %s35_s28 = int_to_ptr.vmem [resolvable:$true] %s34_s28 }
   0x5   :  { %s534_s10 = smov 4   ;;  %s535_s11 = smov [#allocation3]  }
   0x6   :  { %40 = dma.hbm_to_vmem [thread:$0]  %s33_s26, 1024, %s35_s28, [#allocation7], %s533_s9, %s533_s9, %s534_s10  }
   0x7   :  { %s24_s12 = sshll.u32 %s535_s11, 4  ;;  %s47_s15 = sshll.u32 %s606_s3, 4  ;;  %s25_s12 = int_to_ptr.vmem [resolvable:$true] %s24_s12  ;;  %s48_s15 = int_to_ptr.hbm [resolvable:$true] %s47_s15 }
   0x8   :  { %27 = dma.hbm_to_vmem [thread:$0]  %s23_s8, 128, %s25_s12, [#allocation4]  }
   0x9   :  { %s63_s17 = sshll.u32 %s608_s5, 4  ;;  %s536_s18 = smov [#allocation8]   ;;  %s64_s17 = int_to_ptr.hbm [resolvable:$true] %s63_s17 }
   0xa   :  { %s49_s19 = sshll.u32 %s536_s18, 4  ;;  %s537_s0 = smov [#allocation9]   ;;  %s50_s19 = int_to_ptr.vmem [resolvable:$true] %s49_s19 }
   0xb   :  { %55 = dma.hbm_to_vmem [thread:$0]  %s48_s15, 1024, %s50_s19, [#allocation7], %s533_s9, %s533_s9, %s534_s10  }
   0xc   :  { %s65_s20 = sshll.u32 %s537_s0, 4  ;;  %s66_s20 = int_to_ptr.vmem [resolvable:$true] %s65_s20 }
   0xd   :  { %68 = dma.hbm_to_vmem [thread:$0]  %s64_s17, 128, %s66_s20, [#allocation10]  }
   0xe   :  { %524 = dma.done.wait [#allocation4], 128  }
   0xf   :  { %525 = vsyncadd [#allocation4], 4294967168 }
  0x10   :  { %526 = dma.done.wait [#allocation7], 2048  }
  0x11   :  { %527 = vsyncadd [#allocation7], 4294965248 }
  0x12   :  { %528 = dma.done.wait [#allocation10], 128  }
  0x13   :  { %529 = vsyncadd [#allocation10], 4294967168  ;;  %v380_v0 = vld [vmem:[#allocation6 + $0x38] sm:$0xff]  ;;  %v379_v1 = vld [vmem:[#allocation6 + $0x30] sm:$0xff]  ;;  %v282_v36 = vstv %s609_s6  ;;  %s297_s27 = sshll.u32 %s610_s7, 4  ;;  %vm288_vm0 = vcmask 58368   ;;  %s298_s27 = int_to_ptr.hbm [resolvable:$true] %s297_s27 }
  0x14   :  { %157 = vmatpush.bf16.msra.mxu0 %v380_v0  ;;  %v388_v2 = vld [vmem:[#allocation8 + $0x38] sm:$0xff]  ;;  %v387_v3 = vld [vmem:[#allocation8 + $0x30] sm:$0xff]  ;;  %v378_v4 = vld [vmem:[#allocation6 + $0x28] sm:$0xff] }
  0x15   :  { %243 = vmatpush.bf16.msra.mxu1 %v388_v2  ;;  %v386_v5 = vld [vmem:[#allocation8 + $0x28] sm:$0xff]  ;;  %v377_v6 = vld [vmem:[#allocation6 + $0x20] sm:$0xff]  ;;  %v376_v8 = vld [vmem:[#allocation6 + $0x18] sm:$0xff] }
  0x16   :  { %v385_v7 = vld [vmem:[#allocation8 + $0x20] sm:$0xff]  ;;  %v375_v9 = vld [vmem:[#allocation6 + $0x10] sm:$0xff]  ;;  %v374_v10 = vld [vmem:[#allocation6 + $0x8] sm:$0xff] }
  0x17   :  { %v373_v11 = vld [vmem:[#allocation6] sm:$0xff]  ;;  %v87_v12 = vld [vmem:[#allocation3] sm:$0xff]  ;;  %v383_v15 = vld [vmem:[#allocation8 + $0x10] sm:$0xff] }
  0x18   :  { %158 = vmatpush.bf16.msra.mxu0 %v379_v1  ;;  %v88_v13 = vpack.c.bf16 %v87_v12, %v87_v12  ;;  %v384_v14 = vld [vmem:[#allocation8 + $0x18] sm:$0xff]  ;;  %v382_v16 = vld [vmem:[#allocation8 + $0x8] sm:$0xff]  ;;  %v381_v17 = vld [vmem:[#allocation8] sm:$0xff] }
  0x19   :  { %244 = vmatpush.bf16.msra.mxu1 %v387_v3  ;;  %v396_v18 = vld [vmem:[%s605_s2] ss:$0 sm:$0xff]  ;;  %v260_v35 = vld [vmem:[#allocation9] sm:$0xff] }
  0x1a   :  { %v397_v27 = vld [vmem:[%s607_s4] ss:$0 sm:$0xff]  ;;  %s538_s4 = smov [#allocation11]  }
  0x1b   :  { %s295_s24 = sshll.u32 %s538_s4, 4  ;;  %s296_s24 = int_to_ptr.vmem [resolvable:$true] %s295_s24 }
  0x1c   :  { %159 = vmatpush.bf16.msra.mxu0 %v378_v4 }
  0x1d   :  { %245 = vmatpush.bf16.msra.mxu1 %v386_v5 }
  0x20   :  { %160 = vmatpush.bf16.msra.mxu0 %v377_v6 }
  0x21   :  { %246 = vmatpush.bf16.msra.mxu1 %v385_v7 }
  0x24   :  { %161 = vmatpush.bf16.msra.mxu0 %v376_v8 }
  0x25   :  { %247 = vmatpush.bf16.msra.mxu1 %v384_v14 }
  0x28   :  { %162 = vmatpush.bf16.msra.mxu0 %v375_v9 }
  0x29   :  { %248 = vmatpush.bf16.msra.mxu1 %v383_v15 }
  0x2c   :  { %163 = vmatpush.bf16.msra.mxu0 %v374_v10 }
  0x2d   :  { %249 = vmatpush.bf16.msra.mxu1 %v382_v16 }
  0x30   :  { %164 = vmatpush.bf16.msra.mxu0 %v373_v11 }
  0x31   :  { %250 = vmatpush.bf16.msra.mxu1 %v381_v17 }
  0x33   :  { %165 = vmatmul.bf16.vlgmr.msra.gmra.mxu0 %v88_v13 }
  0xb0   :  { %v166_v19 = vpop.f32.mrf.mxu0 }
  0xb1   :  { %v167_v20 = vadd.f32 %v396_v18, %v166_v19 }
  0xb3   :  { %v170_v21 = vmul.f32 0.5, %v167_v20 }
  0xb5   :  { %398 = vtanh.f32 %v170_v21 }
  0xb8   :  { %v168_v22 = vpop.f32.mrf.mxu0 }
  0xbb   :  { %v399_v23 = vpop.eup %398 }
  0xbc   :  { %v172_v24 = vadd.f32 1.0, %v399_v23 }
  0xbe   :  { %v173_v25 = vmul.f32 %v172_v24, %v170_v21 }
  0xc0   :  { %v174_v26 = vpack.c.bf16 %v173_v25, %v173_v25 }
  0xc2   :  { %251 = vmatmul.bf16.vlgmr.msra.gmra.mxu1 %v174_v26 }
 0x13f   :  { %v252_v28 = vpop.f32.mrf.mxu1 }
 0x140   :  { %v253_v29 = vadd.f32 %v397_v27, %v252_v28 }
 0x142   :  { %v256_v30 = vmul.f32 0.5, %v253_v29 }
 0x144   :  { %400 = vtanh.f32 %v256_v30 }
 0x147   :  { %v254_v31 = vpop.f32.mrf.mxu1 }
 0x14a   :  { %v401_v32 = vpop.eup %400 }
 0x14b   :  { %v258_v33 = vadd.f32 1.0, %v401_v32 }
 0x14d   :  { %v259_v34 = vmul.f32 %v258_v33, %v256_v30 }
 0x14f   :  { %276 = vmatpush.xpose.msra.mxu2 %v259_v34 }
 0x152   :  { %277 = vmatmul.f32.vlgmr.msra.gmra.mxu2 %v260_v35 }
 0x1d5   :  { %v278_v37 = vpop.f32.mrf.mxu2 }
 0x1d6   :  { %v283_v38 = vadd.f32 %v282_v36, %v278_v37 }
 0x1d8   :  { %v284_v39 = vmul.f32 0.5, %v283_v38 }
 0x1da   :  { %402 = vtanh.f32 %v284_v39 }
 0x1e0   :  { %v403_v40 = vpop.eup %402 }
 0x1e1   :  { %v286_v41 = vadd.f32 1.0, %v403_v40 }
 0x1e3   :  { %v287_v42 = vmul.f32 0.5, %v286_v41 }
 0x1e5   :  { %289 = vst.msk [vmem:[#allocation11] sm:$0x3] %vm288_vm0, %v287_v42 }
 0x1e6   :  { %300 = dma.vmem_to_hbm [thread:$0]  %s296_s24, 32, %s298_s27, [#allocation5]  }
 0x1e7   :  { %530 = dma.done.wait [#allocation5], 32  }
 0x1e8   :  { %531 = vsyncadd [#allocation5], 4294967264 }
 0x1e9   :  { %305 = vsyncpa [#allocation4], 1 }
 0x1ea   :  { %306 = vsyncpa [#allocation7], 1 }
 0x1eb   :  { %307 = vsyncpa [#allocation10], 1 }
 0x1ec   :  { %308 = vsyncpa [#allocation5], 1 }

</bundles_post_ra>
